<compile_context>
chip_gen: v7x
topology: tpu7x:2x2x1
jax: 0.10.0
libtpu: 0.0.40
codegen_flags: <defaults>
</compile_context>

<pallas_src>
import jax
import jax.numpy as jnp
from jax import lax
from jax.experimental import pallas as pl
from jax.experimental.pallas import tpu as pltpu


def _round_up(x: int, m: int) -> int:
    return (x + m - 1) // m * m


def _sublane_multiple(dtype) -> int:
    itemsize = jnp.dtype(dtype).itemsize
    return {4: 8, 2: 16, 1: 32}.get(itemsize, 8)


def _vmem_budget_bytes() -> int:
    """Per-generation scoped-VMEM budget with headroom for Mosaic scratch."""
    try:
        physical = pltpu.get_tpu_info().vmem_capacity_bytes
    except Exception:
        physical = 64 << 20          # conservative (v7x-sized) fallback
    # ~78% of physical: ~50 MiB on v7x (64 MiB), ~100 MiB on v5e/v6e (128 MiB).
    return int(min(physical * 0.78, 100 << 20))


# ----------------------------- kernels --------------------------------------


def _mlp1_resident_kernel(x_ref, w_ref, b_ref, o_ref):
    # x_ref: (tb, Kp)  w_ref: (Kp, tn)  b_ref: (1, tn)  o_ref: (tb, tn)
    # K is untiled -> single MXU pass, no accumulator, pure streaming x -> y.
    y = jnp.dot(x_ref[...], w_ref[...], preferred_element_type=jnp.float32)
    y = y + b_ref[...].astype(jnp.float32)
    o_ref[...] = jnp.maximum(y, 0.0).astype(o_ref.dtype)


def _mlp1_tiled_kernel_f32out(x_ref, w_ref, b_ref, o_ref):
    # f32 output: accumulate straight into the K-resident output block.
    k = pl.program_id(2)

    @pl.when(k == 0)
    def _():
        o_ref[...] = jnp.zeros_like(o_ref)

    o_ref[...] += jnp.dot(x_ref[...], w_ref[...],
                          preferred_element_type=jnp.float32)

    @pl.when(k == pl.num_programs(2) - 1)
    def _():
        o_ref[...] = jnp.maximum(o_ref[...] + b_ref[...].astype(jnp.float32),
                                 0.0)


def _mlp1_tiled_kernel_acc(x_ref, w_ref, b_ref, o_ref, acc_ref):
    # Non-f32 output: keep an f32 VMEM accumulator, cast only at the end.
    k = pl.program_id(2)

    @pl.when(k == 0)
    def _():
        acc_ref[...] = jnp.zeros_like(acc_ref)

    acc_ref[...] += jnp.dot(x_ref[...], w_ref[...],
                            preferred_element_type=jnp.float32)

    @pl.when(k == pl.num_programs(2) - 1)
    def _():
        y = acc_ref[...] + b_ref[...].astype(jnp.float32)
        o_ref[...] = jnp.maximum(y, 0.0).astype(o_ref.dtype)


# ----------------------------- wrapper ---------------------------------------


def mlp1_prepare_weights(weight):
    """One-time (load-time) conversion of nn.Linear weight [out, in] to the
    MXU-native RHS layout [in, out]. Call once; not in the per-call hot path."""
    return jnp.asarray(weight).T


def mlp1_forward(x, weight_t, bias, *, tile_b=512, tile_n=512, tile_k=1024,
                 compute_dtype=None, vmem_limit_bytes=None, force_tiled=False):
    """y = relu(x @ weight_t + bias), weight_t in [in_dim, out_dim] layout."""
    B, K = x.shape
    K_w, N = weight_t.shape
    assert K == K_w, "weight/in_dim mismatch"
    assert bias.shape == (N,), "bias shape mismatch"

    out_dtype = x.dtype
    out_itemsize = jnp.dtype(out_dtype).itemsize
    out_is_f32 = jnp.dtype(out_dtype) == jnp.dtype(jnp.float32)
    in_dtype = jnp.dtype(compute_dtype) if compute_dtype is not None else jnp.dtype(x.dtype)
    itemsize = in_dtype.itemsize
    sub = _sublane_multiple(in_dtype)

    budget = int(_vmem_budget_bytes() if vmem_limit_bytes is None
                 else vmem_limit_bytes)

    # Normalize requested tiles to hardware alignment.
    tile_b = _round_up(max(tile_b, sub), sub)
    tile_n = _round_up(max(tile_n, 128), 128)
    tile_k = _round_up(max(tile_k, 128), 128)

    Np_full = _round_up(N, 128)
    Kp_full = _round_up(K, 128)

    def _vmem_need(tb_, tn_, tk_, with_scratch):
        # Double-buffered input/output tiles (+ optional f32 scratch).
        need = 2 * (tb_ * tk_ + tk_ * tn_ + tn_) * itemsize
        need += 2 * tb_ * tn_ * out_itemsize
        if with_scratch:
            need += tb_ * tn_ * 4
        return need

    # ---------------- tile selection ----------------
    resident_w_bytes = Np_full * Kp_full * itemsize
    use_resident = (not force_tiled) and (
        resident_w_bytes <= min(24 << 20, budget // 3))

    if use_resident:
        tk = Kp_full
        tb = min(tile_b, _round_up(B, sub))
        while tb > sub and _vmem_need(tb, Np_full, tk, False) > budget:
            tb = max(sub, _round_up(tb // 2, sub))
        if _vmem_need(tb, Np_full, tk, False) > budget:
            use_resident = False
        else:
            grid_b = _round_up(B, tb) // tb
            if grid_b == 1 and Np_full >= 256 and Np_full % 256 == 0:
                tn = Np_full // 2     # feed both v7x TensorCores on tiny batch
            else:
                tn = Np_full

    if not use_resident:
        tb = min(tile_b, _round_up(B, sub))
        tn = min(tile_n, Np_full)
        tk = min(tile_k, Kp_full)
        scratch = not out_is_f32
        while _vmem_need(tb, tn, tk, scratch) > budget and tk > 128:
            tk = max(128, _round_up(tk // 2, 128))
        while _vmem_need(tb, tn, tk, scratch) > budget and tn > 128:
            tn = max(128, _round_up(tn // 2, 128))
        while _vmem_need(tb, tn, tk, scratch) > budget and tb > sub:
            tb = max(sub, _round_up(tb // 2, sub))

    Bp = _round_up(B, tb)
    Np = _round_up(N, tn)
    Kp = _round_up(K, tk)

    # ---------------- padding / dtype ----------------
    xp = x.astype(in_dtype) if xp_cast_needed(x, in_dtype, compute_dtype) else x
    wp = (weight_t.astype(in_dtype)
          if xp_cast_needed(weight_t, in_dtype, compute_dtype) else weight_t)
    if Bp != B or Kp != K:
        xp = jnp.pad(xp, ((0, Bp - B), (0, Kp - K)))
    if Kp != K or Np != N:
        wp = jnp.pad(wp, ((0, Kp - K), (0, Np - N)))
    bp = bias if Np == N else jnp.pad(bias, (0, Np - N))
    bp = bp.reshape(1, Np)

    # ---------------- pallas_call ----------------
    if use_resident:
        grid = (Bp // tb, Np // tn)
        kernel = _mlp1_resident_kernel
        in_specs = [
            pl.BlockSpec((tb, Kp), lambda i, j: (i, 0)),
            pl.BlockSpec((Kp, tn), lambda i, j: (0, j)),
            pl.BlockSpec((1, tn), lambda i, j: (0, j)),
        ]
        out_specs = pl.BlockSpec((tb, tn), lambda i, j: (i, j))
        scratch_shapes = []
        dim_sem = ("parallel", "parallel")
        bytes_accessed = ((Bp * Kp + Kp * Np + Np) * itemsize
                          + Bp * Np * out_itemsize)
    else:
        grid = (Bp // tb, Np // tn, Kp // tk)
        gi, gj, _ = grid
        in_specs = [
            pl.BlockSpec((tb, tk), lambda i, j, k: (i, k)),
            pl.BlockSpec((tk, tn), lambda i, j, k: (k, j)),
            pl.BlockSpec((1, tn), lambda i, j, k: (0, j)),
        ]
        out_specs = pl.BlockSpec((tb, tn), lambda i, j, k: (i, j))
        if out_is_f32:
            kernel = _mlp1_tiled_kernel_f32out
            scratch_shapes = []
        else:
            kernel = _mlp1_tiled_kernel_acc
            scratch_shapes = [pltpu.VMEM((tb, tn), jnp.float32)]
        dim_sem = ("parallel", "parallel", "arbitrary")
        # x re-read per N tile, W re-read per B tile.
        bytes_accessed = ((Bp * Kp * gj + Kp * Np * gi + Np * gi) * itemsize
                          + Bp * Np * out_itemsize)

    cost = pl.CostEstimate(flops=2 * Bp * Kp * Np, transcendentals=0,
                           bytes_accessed=int(bytes_accessed))

    out = pl.pallas_call(
        kernel,
        out_shape=jax.ShapeDtypeStruct((Bp, Np), out_dtype),
        grid_spec=pltpu.PrefetchScalarGridSpec(
            num_scalar_prefetch=0,
            grid=grid,
            in_specs=in_specs,
            out_specs=out_specs,
            scratch_shapes=scratch_shapes),
        compiler_params=pltpu.CompilerParams(
            dimension_semantics=dim_sem,
            vmem_limit_bytes=budget),
        cost_estimate=cost,
    )(xp, wp, bp)

    if Bp != B or Np != N:
        out = out[:B, :N]
    return out


def xp_cast_needed(arr, in_dtype, compute_dtype):
    return compute_dtype is not None and arr.dtype != in_dtype


if __name__ == "__main__":
    # Module defaults: input_dim=512, output_dim=512; small batch for the demo.
    batch, input_dim, output_dim = 16, 512, 512

    key = jax.random.PRNGKey(0)
    kx, kw, kb = jax.random.split(key, 3)

    x = jax.random.normal(kx, (batch, input_dim), dtype=jnp.float32)
    # Deterministic init mimicking nn.Linear's uniform(-1/sqrt(in), 1/sqrt(in)).
    bound = 1.0 / (input_dim ** 0.5)
    weight = jax.random.uniform(kw, (output_dim, input_dim),
                                minval=-bound, maxval=bound, dtype=jnp.float32)
    bias = jax.random.uniform(kb, (output_dim,),
                              minval=-bound, maxval=bound, dtype=jnp.float32)

    # One-time load-time layout change (not part of the per-call hot path).
    weight_t = mlp1_prepare_weights(weight)

    # Reference (full-precision f32).
    y_ref = jnp.maximum(
        jnp.dot(x, weight_t, precision=lax.Precision.HIGHEST) + bias, 0.0)

    # 1) Default path: weight-resident kernel (512x512 f32 W = 1 MiB in VMEM).
    y = jax.block_until_ready(mlp1_forward(x, weight_t, bias))
    assert y.shape == y_ref.shape
    assert jnp.allclose(y, y_ref, atol=5e-4, rtol=5e-4), "resident path mismatch"

    # 2) Forced K-tiled path (exercises the accumulate-into-output kernel).
    y2 = jax.block_until_ready(
        mlp1_forward(x, weight_t, bias, force_tiled=True,
                     tile_b=128, tile_n=128, tile_k=128))
    assert y2.shape == y_ref.shape
    assert jnp.allclose(y2, y_ref, atol=5e-4, rtol=5e-4), "tiled path mismatch"

    print("KERNEL_OK")
</pallas_src>

<mosaic_0001>
module attributes {stable_mosaic.version = 11 : i64} {
  func.func @_mlp1_resident_kernel(%arg0: i32, %arg1: i32, %arg2: memref<16x512xf32, #tpu.memory_space<vmem>>, %arg3: memref<512x256xf32, #tpu.memory_space<vmem>>, %arg4: memref<1x256xf32, #tpu.memory_space<vmem>>, %arg5: memref<16x256xf32, #tpu.memory_space<vmem>>) attributes {dimension_semantics = [#tpu.dimension_semantics<parallel>, #tpu.dimension_semantics<parallel>], iteration_bounds = array<i64: 1, 2>, scalar_prefetch = 0 : i64, scratch_operands = 0 : i64, tpu.core_type = #tpu.core_type<tc>, window_params = [{transform_indices = @transform_0, window_bounds = array<i64: 16, 512>}, {transform_indices = @transform_1, window_bounds = array<i64: 512, 256>}, {transform_indices = @transform_2, window_bounds = array<i64: 1, 256>}, {transform_indices = @transform_3, window_bounds = array<i64: 16, 256>}]} {
    %c0 = arith.constant 0 : index
    %c0_0 = arith.constant 0 : index
    %0 = vector.load %arg2[%c0, %c0_0] : memref<16x512xf32, #tpu.memory_space<vmem>>, vector<16x512xf32>
    %c0_1 = arith.constant 0 : index
    %c0_2 = arith.constant 0 : index
    %1 = vector.load %arg3[%c0_1, %c0_2] : memref<512x256xf32, #tpu.memory_space<vmem>>, vector<512x256xf32>
    %cst = arith.constant dense<0.000000e+00> : vector<16x256xf32>
    %2 = tpu.matmul %0, %1, %cst {dimension_numbers = #tpu.dot_dimension_numbers<[1], [0], [0], [1], [0, 0, 1, 1], [], []>} : vector<16x512xf32>, vector<512x256xf32>, vector<16x256xf32> -> vector<16x256xf32>
    %c0_3 = arith.constant 0 : index
    %c0_4 = arith.constant 0 : index
    %3 = vector.load %arg4[%c0_3, %c0_4] : memref<1x256xf32, #tpu.memory_space<vmem>>, vector<1x256xf32>
    %4 = vector.broadcast %3 : vector<1x256xf32> to vector<16x256xf32>
    %5 = arith.addf %2, %4 : vector<16x256xf32>
    %cst_5 = arith.constant 0.000000e+00 : f32
    %6 = vector.broadcast %cst_5 : f32 to vector<16x256xf32>
    %7 = arith.maximumf %5, %6 : vector<16x256xf32>
    %c0_6 = arith.constant 0 : index
    %c0_7 = arith.constant 0 : index
    %8 = vector.load %arg5[%c0_6, %c0_7] : memref<16x256xf32, #tpu.memory_space<vmem>>, vector<16x256xf32>
    tpu.vector_store %arg5[%c0_6, %c0_7], %7 {strides = array<i32>} : memref<16x256xf32, #tpu.memory_space<vmem>>, vector<16x256xf32>,
    return
  }
  func.func @transform_0(%arg0: i32, %arg1: i32) -> (i32, i32) {
    %c0_i32 = arith.constant 0 : i32
    %c0_i32_0 = arith.constant 0 : i32
    return %arg0, %c0_i32 : i32, i32
  }
  func.func @transform_1(%arg0: i32, %arg1: i32) -> (i32, i32) {
    %c0_i32 = arith.constant 0 : i32
    %c0_i32_0 = arith.constant 0 : i32
    return %c0_i32, %arg1 : i32, i32
  }
  func.func @transform_2(%arg0: i32, %arg1: i32) -> (i32, i32) {
    %c0_i32 = arith.constant 0 : i32
    %c0_i32_0 = arith.constant 0 : i32
    return %c0_i32, %arg1 : i32, i32
  }
  func.func @transform_3(%arg0: i32, %arg1: i32) -> (i32, i32) {
    %c0_i32 = arith.constant 0 : i32
    return %arg0, %arg1 : i32, i32
  }
}

</mosaic_0001>

<bundles_post_ra>
// kernel: tpu_custom_call.1
= control target key start
LH: loop header
LB: loop body
LE: loop exit
PB: predicated region body
PF: predicated region fallthrough
CT: control target
= control target key end

     0   :  { %8 = vsyncpa [#allocation3], 0  ;;  %s1454_s0 = inlined_call_operand.hbm [shape: f32[16,512], index: 0, kind: input, shape index: {}]   ;;  %s1455_s1 = inlined_call_operand.hbm [shape: f32[512,512], index: 1, kind: input, shape index: {}]   ;;  %s1456_s2 = inlined_call_operand.vmem [shape: f32[1,512], index: 2, kind: input, shape index: {}]   ;;  %s1457_s3 = inlined_call_operand.hbm [shape: f32[16,512], index: 3, kind: output, shape index: {}]  }
   0x1   :  { %9 = vsyncpa [#allocation6], 0 }
   0x2   :  { %11 = vsyncpa [#allocation6 + $0x1], 0 }
   0x3   :  { %12 = vsyncpa [#allocation4], 0 }
   0x4   :  { %14 = vsyncpa [#allocation4 + $0x1], 0  ;;  %s1096_s12 = smov 0   ;;  %s1098_s13 = smov 0  }
   0x5   :  { %s1100_s14 = smov 0   ;;  %s1102_s15 = smov 0  }
   0x6   :  { %s1104_s16 = smov 0   ;;  %s1106_s17 = smov 0  }
   0x7 LB: > { %s684_s18 = sadd.s32 4294967295, %s1064_s17   ;;  %s685_s19 = sadd.s32 4294967294, %s1064_s17   ;;  %s1064_s17 = sphi %s1106_s17, %s20_s17   ;;  %s1060_s16 = sphi %s1104_s16, %s1483_s16   ;;  %s1056_s15 = sphi %s1102_s15, %s1482_s15   ;;  %s1052_s14 = sphi %s1100_s14, %s1481_s14   ;;  %s1048_s13 = sphi %s1098_s13, %s1480_s13   ;;  %s1044_s12 = sphi %s1096_s12, %s1479_s12  }
   0x8   : > { %p72_p0 = scmp.ne.s32.totalorder %s1052_s14, %s1048_s13  ;;  %p73_p1 = scmp.eq.s32.totalorder %s1064_s17, 0 }
   0x9   : > { %p78_p2 = scmp.ne.s32.totalorder %s1048_s13, %s1044_s12  ;;  %p1133_p3 = scmp.eq.s32.totalorder %s684_s18, 0 }
   0xa   : > { %p1137_p4 = por %p73_p1, %p72_p0  ;;  %p130_p5 = scmp.eq.s32.totalorder %s684_s18, 1 }
   0xb   : > { %s1464_s20 = scalar_select %p1133_p3, 1, 0 }
   0xc   : > { %p1143_p6 = por %p1133_p3, %p78_p2  ;;  %p136_p7 = scmp.eq.s32.totalorder %s685_s19, 1 }
   0xd   : > { %p1147_p8 = por %p130_p5, %p72_p0  ;;  %p686_p9 = scmp.ge.s32.totalorder %s1064_s17, 1 }
   0xe   : > { %s1466_s22 = scalar_select %p1143_p6, 1, 0 }
   0xf   : > { %s1467_s23 = scalar_select %p1147_p8, 1, 0 }
  0x10   : > { %p1152_p10 = por %p136_p7, %p78_p2  ;;  %p143_p11 = scmp.lt.s32.totalorder %s1064_s17, 3 }
  0x11   : > { %s1066_s26 = smov [#allocation2]   ;;  %p861_p1 = scmp.lt.s32.totalorder %s1064_s17, 2 }
  0x12   : > { %s1468_s24 = scalar_select %p1152_p10, 1, 0 }
  0x13   : > { %p1157_p12 = pnand %p686_p9, %p143_p11  ;;  %s159_s27 = sshll.u32 %s1066_s26, 4  ;;  %s1161_s27 = int_to_ptr.vmem [resolvable:$true] %s159_s27 }
  0x14   : > { %p1175_p2 = pnand %p861_p1, %p1137_p4  ;;  %s29_s30 = sadd.s32 1, %s1060_s16 }
  0x15   : > { %s1469_s25 = scalar_select %p1157_p12, 1, 0 }
  0x16   : > { %p848_p13 = pneg %p1157_p12  ;;  %s920_s6 = scalar_lea.hbm %s1454_s0, 1024 }
  0x17   : > { %s1471_s29 = scalar_select %p1175_p2, 1, 0 }
  0x18   : > { %p1169_p5 = pnand %p848_p13, %p1133_p3  ;;  %p921_p7 = scmp.ne.s32.totalorder %s1454_s0, %s920_s6 }
  0x19   : > { %p927_p4 = scmp.lt.u32.totalorder %s920_s6, %s1454_s0 }
  0x1a   : > { %p922_p9 = pneg %p1169_p5 }
  0x1c   : > { %p923_p11 = pnand %p922_p9, %p921_p7 }
  0x1e   : > { %p924_p13 = pneg %p923_p11 }
  0x20   : > { %p929_p1 = pnand %p927_p4, %p924_p13 }
  0x22   : > { %932 = shalt.err (!%p929_p1)
}
  0x23   : > { %s933_s11 = scalar_lea.vmem %s1161_s27, 1024  ;;  %p941_p6 = scmp.lt.s32.totalorder %s1161_s27, %s1161_s27 }
  0x24   : > { %p934_p0 = scmp.ne.s32.totalorder %s1161_s27, %s933_s11  ;;  %p942_p3 = scmp.lt.s32.totalorder %s933_s11, %s933_s11 }
  0x26   : > { %p936_p10 = pnand %p934_p0, %p922_p9  ;;  %p943_p12 = por %p942_p3, %p941_p6 }
  0x28   : > { %p937_p8 = pneg %p936_p10 }
  0x2a   : > { %p944_p2 = pnand %p943_p12, %p937_p8 }
  0x2c   : > { %947 = shalt.err (!%p944_p2)
}
  0x2d   : > { %s1067_s18 = smov 512   ;;  %s1068_s19 = smov 32  }
  0x2e   : > { %851 = dma.hbm_to_vmem [thread:$0]  (!%p1169_p5), %s1454_s0, 1024, %s1161_s27, [#allocation3], %s1067_s18, %s1067_s18, %s1068_s19  }
  0x2f   : > { %p30_p10 = scmp.ge.s32.totalorder %s29_s30, 2  ;;  %s65_s4 = sadd.s32 1, %s1052_s14 }
  0x30   : > { %s173_s5 = sand.u32 1, %s1052_s14   ;;  %s702_s8 = sshll.u32 %s1060_s16, 8 }
  0x31   : > { %s1485_s30 = smov (%p30_p10, %s29_s30), 0  ;;  %s689_s6 = sshll.u32 %s173_s5, 10 }
  0x32   : > { %s62_s7 = ssub.s32 %s1060_s16, %s1485_s30  ;;  %s1213_s10 = scalar_lea.hbm %s1455_s1, %s702_s8 }
  0x33   : > { %p63_p3 = scmp.eq.s32.totalorder %s62_s7, 0  ;;  %s177_s27 = scalar_lea.vmem [#allocation5], %s689_s6 }
  0x34   : > { %s184_s11 = sshll.u32 %s177_s27, 4  ;;  %s1220_s21 = scalar_lea.sflag [#allocation6], %s173_s5  ;;  %s1218_s11 = int_to_ptr.vmem [resolvable:$true] %s184_s11 }
  0x35   : > { %s1216_s19 = scalar_select %p63_p3, %s1052_s14, %s65_s4  }
  0x36   : > { %s948_s26 = scalar_lea.hbm %s1213_s10, 16384  ;;  %p1472_p8 = scmp.ne.s32.totalorder %s1471_s29, 0 }
  0x37   : > { %p949_p6 = scmp.ne.s32.totalorder %s1213_s10, %s948_s26  ;;  %s953_s9 = scalar_lea.hbm %s1455_s1, 32768 }
  0x38   : > { %p950_p12 = pneg %p1472_p8  ;;  %p954_p2 = scmp.lt.u32.totalorder %s1213_s10, %s1455_s1 }
  0x39   : > { %p955_p7 = scmp.lt.u32.totalorder %s953_s9, %s948_s26  ;;  %p957_p11 = scmp.lt.u32.totalorder %s948_s26, %s1213_s10 }
  0x3a   : > { %p951_p0 = pnand %p950_p12, %p949_p6 }
  0x3b   : > { %p956_p9 = por %p955_p7, %p954_p2 }
  0x3c   : > { %p952_p5 = pneg %p951_p0 }
  0x3d   : > { %p958_p13 = por %p957_p11, %p956_p9 }
  0x3f   : > { %p959_p4 = pnand %p958_p13, %p952_p5 }
  0x41   : > { %962 = shalt.err (!%p959_p4)
}
  0x42   : > { %s963_s4 = scalar_lea.vmem %s1218_s11, 16384  ;;  %s1069_s5 = smov [#allocation5]  }
  0x43   : > { %p964_p1 = scmp.ne.s32.totalorder %s1218_s11, %s963_s4  ;;  %s968_s27 = sshll.u32 %s1069_s5, 4  ;;  %s969_s27 = int_to_ptr.vmem [resolvable:$false] %s968_s27 }
  0x44   : > { %s970_s7 = scalar_lea.vmem %s969_s27, 32768  ;;  %p971_p6 = scmp.lt.s32.totalorder %s1218_s11, %s969_s27 }
  0x45   : > { %p966_p10 = pnand %p964_p1, %p950_p12  ;;  %p972_p0 = scmp.lt.s32.totalorder %s970_s7, %s963_s4 }
  0x47   : > { %p967_p3 = pneg %p966_p10  ;;  %p973_p2 = por %p972_p0, %p971_p6 }
  0x49   : > { %p974_p7 = pnand %p973_p2, %p967_p3 }
  0x4b   : > { %977 = shalt.err (!%p974_p7)
}
  0x4c   : > { %s1070_s26 = smov 256   ;;  %s1071_s8 = smov 16  }
  0x4d   : > { %855 = dma.hbm_to_vmem [thread:$0]  (!%p1472_p8), %s1213_s10, 16384, %s1218_s11, %s1220_s21, %s1067_s18, %s1070_s26, %s1071_s8  }
  0x4e   : > { %p1473_p12 = scmp.ne.s32.totalorder %s1469_s25, 0 }
  0x4f   : > { %p1474_p5 = scmp.ne.s32.totalorder (!%p1473_p12), %s1464_s20, 0 }
  0x50   : > { %204 = sbr.rel (%p1473_p12) target bundleno = 398 (0x18e), region = 32 }
  0x57   : > { %1031 = dma.done.wait (%p1474_p5), [#allocation3], 1024  }
  0x58   : > { %1033 = vsyncadd (%p1474_p5), [#allocation3], 4294966272  ;;  %s1256_s9 = sand.u32 1, %s1048_s13   ;;  %p1475_p8 = scmp.ne.s32.totalorder %s1466_s22, 0 }
  0x59   : > { %s694_s6 = sshll.u32 %s1256_s9, 10  ;;  %s211_s28 = scalar_lea.sflag [#allocation6], %s1256_s9 }
  0x5a   : > { %s1260_s29 = scalar_lea.vmem [#allocation5], %s694_s6 }
  0x5b   : > { %1035 = dma.done.wait (%p1475_p8), %s211_s28, 16384  }
  0x5c   : > { %1037 = vsyncadd (%p1475_p8), %s211_s28, 4294950912  ;;  %v259_v0 = vld [vmem:[%s1260_s29 + $0x8] sm:$0xff]  ;;  %v261_v1 = vld [vmem:[%s1260_s29 + $0x18] sm:$0xff]  ;;  %s696_s20 = sshll.u32 %s1056_s15, 1  ;;  %s695_s10 = sshll.u32 %s1256_s9, 5 }
  0x5d   : > { %v258_v2 = vld [vmem:[%s1260_s29] sm:$0xff]  ;;  %v704_v3 = vpack.c.bf16 %v261_v1, %v259_v0  ;;  %v260_v4 = vld [vmem:[%s1260_s29 + $0x10] sm:$0xff]  ;;  %v323_v5 = vld [vmem:[%s1260_s29 + $0x208] sm:$0xff]  ;;  %p244_p9 = scmp.lt.s32.totalorder %s696_s20, 3  ;;  %s240_s11 = scalar_lea.vmem [#allocation7], %s695_s10 }
  0x5e   : > { %v325_v6 = vld [vmem:[%s1260_s29 + $0x218] sm:$0xff]  ;;  %v706_v7 = vpack.c.bf16 %v260_v4, %v258_v2  ;;  %v322_v9 = vld [vmem:[%s1260_s29 + $0x200] sm:$0xff]  ;;  %v324_v10 = vld [vmem:[%s1260_s29 + $0x210] sm:$0xff]  ;;  %s577_s21 = sshll.u32 %s240_s11, 4  ;;  %s703_s4 = sshll.u32 %s1056_s15, 8  ;;  %s1400_s21 = int_to_ptr.vmem [resolvable:$true] %s577_s21 }
  0x5f   : > { %v768_v8 = vpack.c.bf16 %v325_v6, %v323_v5  ;;  %v263_v11 = vld [vmem:[%s1260_s29 + $0x28] sm:$0xff]  ;;  %705 = vmatprep.subr.bf16.mxu1 %v704_v3  ;;  %v770_v12 = vpack.c.bf16 %v324_v10, %v322_v9  ;;  %v265_v13 = vld [vmem:[%s1260_s29 + $0x38] sm:$0xff]  ;;  %v262_v14 = vld [vmem:[%s1260_s29 + $0x20] sm:$0xff]  ;;  %s1487_s20 = smov (!%p244_p9, %s696_s20), 3  ;;  %s1405_s7 = scalar_lea.hbm %s1457_s3, %s703_s4 }
  0x60   : > { %v264_v15 = vld [vmem:[%s1260_s29 + $0x30] sm:$0xff]  ;;  %707 = vmatpush1.bf16.msra.mxu1 %v706_v7  ;;  %v708_v16 = vpack.c.bf16 %v265_v13, %v263_v11  ;;  %v327_v18 = vld [vmem:[%s1260_s29 + $0x228] sm:$0xff]  ;;  %v329_v19 = vld [vmem:[%s1260_s29 + $0x238] sm:$0xff]  ;;  %s246_s18 = scalar_lea.vmem %s1456_s2, %s1487_s20  ;;  %s561_s26 = scalar_lea.sflag [#allocation4], %s1256_s9 }
  0x61   : > { %769 = vmatprep.subr.bf16.mxu0 %v768_v8  ;;  %v710_v17 = vpack.c.bf16 %v264_v15, %v262_v14  ;;  %v326_v20 = vld [vmem:[%s1260_s29 + $0x220] sm:$0xff]  ;;  %v772_v21 = vpack.c.bf16 %v329_v19, %v327_v18  ;;  %v328_v22 = vld [vmem:[%s1260_s29 + $0x230] sm:$0xff]  ;;  %v267_v23 = vld [vmem:[%s1260_s29 + $0x48] sm:$0xff]  ;;  %s978_s15 = scalar_lea.vmem %s1400_s21, 512  ;;  %p1476_p13 = scmp.ne.s32.totalorder %s1467_s23, 0 }
  0x62   : > { %771 = vmatpush1.bf16.msra.mxu0 %v770_v12  ;;  %v269_v24 = vld [vmem:[%s1260_s29 + $0x58] sm:$0xff]  ;;  %709 = vmatprep.subr.bf16.mxu1 %v708_v16  ;;  %v774_v25 = vpack.c.bf16 %v328_v22, %v326_v20  ;;  %v266_v27 = vld [vmem:[%s1260_s29 + $0x40] sm:$0xff]  ;;  %v268_v28 = vld [vmem:[%s1260_s29 + $0x50] sm:$0xff]  ;;  %p979_p11 = scmp.ne.s32.totalorder %s1400_s21, %s978_s15  ;;  %s1072_s8 = smov [#allocation7]  }
  0x63   : > { %v712_v26 = vpack.c.bf16 %v269_v24, %v267_v23  ;;  %v331_v29 = vld [vmem:[%s1260_s29 + $0x248] sm:$0xff]  ;;  %773 = vmatprep.subr.bf16.mxu0 %v772_v21  ;;  %v333_v30 = vld [vmem:[%s1260_s29 + $0x258] sm:$0xff]  ;;  %v330_v31 = vld [vmem:[%s1260_s29 + $0x240] sm:$0xff]  ;;  %v714_v33 = vpack.c.bf16 %v268_v28, %v266_v27  ;;  %s982_s6 = sshll.u32 %s1072_s8, 4  ;;  %s983_s6 = int_to_ptr.vmem [resolvable:$false] %s982_s6 }
  0x64   : > { %v332_v32 = vld [vmem:[%s1260_s29 + $0x250] sm:$0xff]  ;;  %711 = vmatpush1.bf16.msra.mxu1 %v710_v17  ;;  %v776_v34 = vpack.c.bf16 %v333_v30, %v331_v29  ;;  %v271_v35 = vld [vmem:[%s1260_s29 + $0x68] sm:$0xff]  ;;  %v273_v36 = vld [vmem:[%s1260_s29 + $0x78] sm:$0xff]  ;;  %p980_p4 = pnand %p979_p11, %p1476_p13  ;;  %s984_s28 = scalar_lea.vmem %s983_s6, 1024 }
  0x65   : > { %v270_v37 = vld [vmem:[%s1260_s29 + $0x60] sm:$0xff]  ;;  %713 = vmatprep.subr.bf16.mxu1 %v712_v26  ;;  %v778_v38 = vpack.c.bf16 %v332_v32, %v330_v31  ;;  %v716_v39 = vpack.c.bf16 %v273_v36, %v271_v35  ;;  %v272_v40 = vld [vmem:[%s1260_s29 + $0x70] sm:$0xff]  ;;  %v335_v41 = vld [vmem:[%s1260_s29 + $0x268] sm:$0xff]  ;;  %p985_p10 = scmp.lt.s32.totalorder %s1400_s21, %s983_s6  ;;  %p986_p3 = scmp.lt.s32.totalorder %s984_s28, %s978_s15 }
  0x66   : > { %775 = vmatpush1.bf16.msra.mxu0 %v774_v25  ;;  %v337_v42 = vld [vmem:[%s1260_s29 + $0x278] sm:$0xff]  ;;  %v334_v44 = vld [vmem:[%s1260_s29 + $0x260] sm:$0xff]  ;;  %v336_v45 = vld [vmem:[%s1260_s29 + $0x270] sm:$0xff]  ;;  %v718_v48 = vpack.c.bf16 %v272_v40, %v270_v37  ;;  %p981_p1 = pneg %p980_p4 }
  0x67   : > { %777 = vmatprep.subr.bf16.mxu0 %v776_v34  ;;  %v780_v43 = vpack.c.bf16 %v337_v42, %v335_v41  ;;  %v275_v46 = vld [vmem:[%s1260_s29 + $0x88] sm:$0xff]  ;;  %v277_v47 = vld [vmem:[%s1260_s29 + $0x98] sm:$0xff]  ;;  %v782_v51 = vpack.c.bf16 %v336_v45, %v334_v44  ;;  %v274_v53 = vld [vmem:[%s1260_s29 + $0x80] sm:$0xff]  ;;  %p987_p6 = por %p986_p3, %p985_p10 }
  0x68   : > { %715 = vmatpush1.bf16.msra.mxu1 %v714_v33  ;;  %v339_v49 = vld [vmem:[%s1260_s29 + $0x288] sm:$0xff]  ;;  %v341_v50 = vld [vmem:[%s1260_s29 + $0x298] sm:$0xff]  ;;  %v720_v52 = vpack.c.bf16 %v277_v47, %v275_v46  ;;  %v276_v54 = vld [vmem:[%s1260_s29 + $0x90] sm:$0xff] }
  0x69   : > { %717 = vmatprep.subr.bf16.mxu1 %v716_v39  ;;  %v338_v55 = vld [vmem:[%s1260_s29 + $0x280] sm:$0xff]  ;;  %v784_v56 = vpack.c.bf16 %v341_v50, %v339_v49  ;;  %v340_v57 = vld [vmem:[%s1260_s29 + $0x290] sm:$0xff]  ;;  %v279_v58 = vld [vmem:[%s1260_s29 + $0xa8] sm:$0xff]  ;;  %v722_v62 = vpack.c.bf16 %v276_v54, %v274_v53  ;;  %p988_p0 = pnand %p987_p6, %p981_p1 }
  0x6a   : > { %779 = vmatpush1.bf16.msra.mxu0 %v778_v38  ;;  %v281_v59 = vld [vmem:[%s1260_s29 + $0xb8] sm:$0xff]  ;;  %v343_v60 = vld [vmem:[%s1260_s29 + $0x2a8] sm:$0xff]  ;;  %v786_v63 = vpack.c.bf16 %v340_v57, %v338_v55  ;;  %v278_v1 = vld [vmem:[%s1260_s29 + $0xa0] sm:$0xff] }
  0x6b   : > { %781 = vmatprep.subr.bf16.mxu0 %v780_v43  ;;  %v345_v61 = vld [vmem:[%s1260_s29 + $0x2b8] sm:$0xff]  ;;  %v724_v0 = vpack.c.bf16 %v281_v59, %v279_v58  ;;  %v280_v2 = vld [vmem:[%s1260_s29 + $0xb0] sm:$0xff]  ;;  %v342_v3 = vld [vmem:[%s1260_s29 + $0x2a0] sm:$0xff] }
  0x6c   : > { %719 = vmatpush1.bf16.msra.mxu1 %v718_v48  ;;  %v788_v4 = vpack.c.bf16 %v345_v61, %v343_v60  ;;  %v344_v5 = vld [vmem:[%s1260_s29 + $0x2b0] sm:$0xff]  ;;  %v283_v6 = vld [vmem:[%s1260_s29 + $0xc8] sm:$0xff]  ;;  %v285_v7 = vld [vmem:[%s1260_s29 + $0xd8] sm:$0xff]  ;;  %v726_v10 = vpack.c.bf16 %v280_v2, %v278_v1 }
  0x6d   : > { %721 = vmatprep.subr.bf16.mxu1 %v720_v52  ;;  %v347_v8 = vld [vmem:[%s1260_s29 + $0x2c8] sm:$0xff]  ;;  %v349_v9 = vld [vmem:[%s1260_s29 + $0x2d8] sm:$0xff]  ;;  %v790_v11 = vpack.c.bf16 %v344_v5, %v342_v3  ;;  %v728_v12 = vpack.c.bf16 %v285_v7, %v283_v6  ;;  %v282_v13 = vld [vmem:[%s1260_s29 + $0xc0] sm:$0xff] }
  0x6e   : > { %783 = vmatpush1.bf16.msra.mxu0 %v782_v51  ;;  %v284_v14 = vld [vmem:[%s1260_s29 + $0xd0] sm:$0xff]  ;;  %v346_v15 = vld [vmem:[%s1260_s29 + $0x2c0] sm:$0xff]  ;;  %v792_v16 = vpack.c.bf16 %v349_v9, %v347_v8  ;;  %v287_v18 = vld [vmem:[%s1260_s29 + $0xe8] sm:$0xff] }
  0x6f   : > { %785 = vmatprep.subr.bf16.mxu0 %v784_v56  ;;  %v348_v17 = vld [vmem:[%s1260_s29 + $0x2d0] sm:$0xff]  ;;  %v289_v19 = vld [vmem:[%s1260_s29 + $0xf8] sm:$0xff]  ;;  %v351_v20 = vld [vmem:[%s1260_s29 + $0x2e8] sm:$0xff]  ;;  %v730_v22 = vpack.c.bf16 %v284_v14, %v282_v13 }
  0x70   : > { %723 = vmatpush1.bf16.msra.mxu1 %v722_v62  ;;  %v353_v21 = vld [vmem:[%s1260_s29 + $0x2f8] sm:$0xff]  ;;  %v794_v23 = vpack.c.bf16 %v348_v17, %v346_v15  ;;  %v732_v24 = vpack.c.bf16 %v289_v19, %v287_v18  ;;  %v286_v25 = vld [vmem:[%s1260_s29 + $0xe0] sm:$0xff]  ;;  %v288_v26 = vld [vmem:[%s1260_s29 + $0xf0] sm:$0xff] }
  0x71   : > { %725 = vmatprep.subr.bf16.mxu1 %v724_v0  ;;  %v350_v27 = vld [vmem:[%s1260_s29 + $0x2e0] sm:$0xff]  ;;  %v796_v28 = vpack.c.bf16 %v353_v21, %v351_v20  ;;  %v352_v29 = vld [vmem:[%s1260_s29 + $0x2f0] sm:$0xff]  ;;  %v291_v30 = vld [vmem:[%s1260_s29 + $0x108] sm:$0xff]  ;;  %v734_v34 = vpack.c.bf16 %v288_v26, %v286_v25 }
  0x72   : > { %787 = vmatpush1.bf16.msra.mxu0 %v786_v63  ;;  %v293_v31 = vld [vmem:[%s1260_s29 + $0x118] sm:$0xff]  ;;  %v355_v32 = vld [vmem:[%s1260_s29 + $0x308] sm:$0xff]  ;;  %v798_v35 = vpack.c.bf16 %v352_v29, %v350_v27  ;;  %v290_v37 = vld [vmem:[%s1260_s29 + $0x100] sm:$0xff] }
  0x73   : > { %789 = vmatprep.subr.bf16.mxu0 %v788_v4  ;;  %v357_v33 = vld [vmem:[%s1260_s29 + $0x318] sm:$0xff]  ;;  %v736_v36 = vpack.c.bf16 %v293_v31, %v291_v30  ;;  %v292_v38 = vld [vmem:[%s1260_s29 + $0x110] sm:$0xff]  ;;  %v354_v39 = vld [vmem:[%s1260_s29 + $0x300] sm:$0xff] }
  0x74   : > { %727 = vmatpush1.bf16.msra.mxu1 %v726_v10  ;;  %v800_v40 = vpack.c.bf16 %v357_v33, %v355_v32  ;;  %v356_v41 = vld [vmem:[%s1260_s29 + $0x310] sm:$0xff]  ;;  %v295_v42 = vld [vmem:[%s1260_s29 + $0x128] sm:$0xff]  ;;  %v297_v43 = vld [vmem:[%s1260_s29 + $0x138] sm:$0xff]  ;;  %v738_v46 = vpack.c.bf16 %v292_v38, %v290_v37 }
  0x75   : > { %729 = vmatprep.subr.bf16.mxu1 %v728_v12  ;;  %v359_v44 = vld [vmem:[%s1260_s29 + $0x328] sm:$0xff]  ;;  %v361_v45 = vld [vmem:[%s1260_s29 + $0x338] sm:$0xff]  ;;  %v802_v47 = vpack.c.bf16 %v356_v41, %v354_v39  ;;  %v740_v48 = vpack.c.bf16 %v297_v43, %v295_v42  ;;  %v294_v49 = vld [vmem:[%s1260_s29 + $0x120] sm:$0xff] }
  0x76   : > { %791 = vmatpush1.bf16.msra.mxu0 %v790_v11  ;;  %v296_v50 = vld [vmem:[%s1260_s29 + $0x130] sm:$0xff]  ;;  %v358_v51 = vld [vmem:[%s1260_s29 + $0x320] sm:$0xff]  ;;  %v804_v52 = vpack.c.bf16 %v361_v45, %v359_v44  ;;  %v299_v54 = vld [vmem:[%s1260_s29 + $0x148] sm:$0xff] }
  0x77   : > { %793 = vmatprep.subr.bf16.mxu0 %v792_v16  ;;  %v360_v53 = vld [vmem:[%s1260_s29 + $0x330] sm:$0xff]  ;;  %v301_v55 = vld [vmem:[%s1260_s29 + $0x158] sm:$0xff]  ;;  %v363_v56 = vld [vmem:[%s1260_s29 + $0x348] sm:$0xff]  ;;  %v742_v58 = vpack.c.bf16 %v296_v50, %v294_v49 }
  0x78   : > { %731 = vmatpush1.bf16.msra.mxu1 %v730_v22  ;;  %v365_v57 = vld [vmem:[%s1260_s29 + $0x358] sm:$0xff]  ;;  %v806_v59 = vpack.c.bf16 %v360_v53, %v358_v51  ;;  %v744_v60 = vpack.c.bf16 %v301_v55, %v299_v54  ;;  %v298_v61 = vld [vmem:[%s1260_s29 + $0x140] sm:$0xff]  ;;  %v300_v62 = vld [vmem:[%s1260_s29 + $0x150] sm:$0xff] }
  0x79   : > { %733 = vmatprep.subr.bf16.mxu1 %v732_v24  ;;  %v362_v63 = vld [vmem:[%s1260_s29 + $0x340] sm:$0xff]  ;;  %v808_v0 = vpack.c.bf16 %v365_v57, %v363_v56  ;;  %v364_v1 = vld [vmem:[%s1260_s29 + $0x350] sm:$0xff]  ;;  %v303_v2 = vld [vmem:[%s1260_s29 + $0x168] sm:$0xff]  ;;  %v746_v6 = vpack.c.bf16 %v300_v62, %v298_v61 }
  0x7a   : > { %795 = vmatpush1.bf16.msra.mxu0 %v794_v23  ;;  %v305_v3 = vld [vmem:[%s1260_s29 + $0x178] sm:$0xff]  ;;  %v367_v4 = vld [vmem:[%s1260_s29 + $0x368] sm:$0xff]  ;;  %v302_v7 = vld [vmem:[%s1260_s29 + $0x160] sm:$0xff]  ;;  %v810_v8 = vpack.c.bf16 %v364_v1, %v362_v63 }
  0x7b   : > { %797 = vmatprep.subr.bf16.mxu0 %v796_v28  ;;  %v369_v5 = vld [vmem:[%s1260_s29 + $0x378] sm:$0xff]  ;;  %v748_v9 = vpack.c.bf16 %v305_v3, %v303_v2  ;;  %v304_v10 = vld [vmem:[%s1260_s29 + $0x170] sm:$0xff]  ;;  %v366_v11 = vld [vmem:[%s1260_s29 + $0x360] sm:$0xff] }
  0x7c   : > { %735 = vmatpush1.bf16.msra.mxu1 %v734_v34  ;;  %v368_v12 = vld [vmem:[%s1260_s29 + $0x370] sm:$0xff]  ;;  %v812_v13 = vpack.c.bf16 %v369_v5, %v367_v4  ;;  %v307_v14 = vld [vmem:[%s1260_s29 + $0x188] sm:$0xff]  ;;  %v309_v15 = vld [vmem:[%s1260_s29 + $0x198] sm:$0xff]  ;;  %v750_v20 = vpack.c.bf16 %v304_v10, %v302_v7 }
  0x7d   : > { %737 = vmatprep.subr.bf16.mxu1 %v736_v36  ;;  %v251_v16 = vld [vmem:[#allocation2 + $0x8] sm:$0xff]  ;;  %v373_v18 = vld [vmem:[%s1260_s29 + $0x398] sm:$0xff]  ;;  %v814_v21 = vpack.c.bf16 %v368_v12, %v366_v11  ;;  %v752_v22 = vpack.c.bf16 %v309_v15, %v307_v14  ;;  %v306_v23 = vld [vmem:[%s1260_s29 + $0x180] sm:$0xff] }
  0x7e   : > { %799 = vmatpush1.bf16.msra.mxu0 %v798_v35  ;;  %v371_v17 = vld [vmem:[%s1260_s29 + $0x388] sm:$0xff]  ;;  %462 = vmatprep.mubr.f32.mxu1 %v251_v16  ;;  %v253_v19 = vld [vmem:[#allocation2 + $0x18] sm:$0xff]  ;;  %v308_v24 = vld [vmem:[%s1260_s29 + $0x190] sm:$0xff] }
  0x7f   : > { %801 = vmatprep.subr.bf16.mxu0 %v800_v40  ;;  %539 = vmatprep.mubr.f32.mxu0 %v253_v19  ;;  %v370_v25 = vld [vmem:[%s1260_s29 + $0x380] sm:$0xff]  ;;  %v816_v26 = vpack.c.bf16 %v373_v18, %v371_v17  ;;  %v372_v27 = vld [vmem:[%s1260_s29 + $0x390] sm:$0xff]  ;;  %v311_v28 = vld [vmem:[%s1260_s29 + $0x1a8] sm:$0xff]  ;;  %v754_v32 = vpack.c.bf16 %v308_v24, %v306_v23 }
  0x80   : > { %739 = vmatpush1.bf16.msra.mxu1 %v738_v46  ;;  %v313_v29 = vld [vmem:[%s1260_s29 + $0x1b8] sm:$0xff]  ;;  %v375_v30 = vld [vmem:[%s1260_s29 + $0x3a8] sm:$0xff]  ;;  %v818_v33 = vpack.c.bf16 %v372_v27, %v370_v25  ;;  %v310_v35 = vld [vmem:[%s1260_s29 + $0x1a0] sm:$0xff] }
  0x81   : > { %741 = vmatprep.subr.bf16.mxu1 %v740_v48  ;;  %v377_v31 = vld [vmem:[%s1260_s29 + $0x3b8] sm:$0xff]  ;;  %v756_v34 = vpack.c.bf16 %v313_v29, %v311_v28  ;;  %v312_v36 = vld [vmem:[%s1260_s29 + $0x1b0] sm:$0xff]  ;;  %v374_v37 = vld [vmem:[%s1260_s29 + $0x3a0] sm:$0xff] }
  0x82   : > { %803 = vmatpush1.bf16.msra.mxu0 %v802_v47  ;;  %v820_v38 = vpack.c.bf16 %v377_v31, %v375_v30  ;;  %v376_v39 = vld [vmem:[%s1260_s29 + $0x3b0] sm:$0xff]  ;;  %v315_v40 = vld [vmem:[%s1260_s29 + $0x1c8] sm:$0xff]  ;;  %v317_v41 = vld [vmem:[%s1260_s29 + $0x1d8] sm:$0xff]  ;;  %v758_v44 = vpack.c.bf16 %v312_v36, %v310_v35 }
  0x83   : > { %805 = vmatprep.subr.bf16.mxu0 %v804_v52  ;;  %v379_v42 = vld [vmem:[%s1260_s29 + $0x3c8] sm:$0xff]  ;;  %v381_v43 = vld [vmem:[%s1260_s29 + $0x3d8] sm:$0xff]  ;;  %v822_v45 = vpack.c.bf16 %v376_v39, %v374_v37  ;;  %v760_v46 = vpack.c.bf16 %v317_v41, %v315_v40  ;;  %v314_v47 = vld [vmem:[%s1260_s29 + $0x1c0] sm:$0xff] }
  0x84   : > { %743 = vmatpush1.bf16.msra.mxu1 %v742_v58  ;;  %v316_v48 = vld [vmem:[%s1260_s29 + $0x1d0] sm:$0xff]  ;;  %v378_v49 = vld [vmem:[%s1260_s29 + $0x3c0] sm:$0xff]  ;;  %v824_v50 = vpack.c.bf16 %v381_v43, %v379_v42  ;;  %v319_v52 = vld [vmem:[%s1260_s29 + $0x1e8] sm:$0xff] }
  0x85   : > { %745 = vmatprep.subr.bf16.mxu1 %v744_v60  ;;  %v380_v51 = vld [vmem:[%s1260_s29 + $0x3d0] sm:$0xff]  ;;  %v321_v53 = vld [vmem:[%s1260_s29 + $0x1f8] sm:$0xff]  ;;  %v383_v54 = vld [vmem:[%s1260_s29 + $0x3e8] sm:$0xff]  ;;  %v762_v56 = vpack.c.bf16 %v316_v48, %v314_v47 }
  0x86   : > { %807 = vmatpush1.bf16.msra.mxu0 %v806_v59  ;;  %v385_v55 = vld [vmem:[%s1260_s29 + $0x3f8] sm:$0xff]  ;;  %v826_v57 = vpack.c.bf16 %v380_v51, %v378_v49  ;;  %v764_v58 = vpack.c.bf16 %v321_v53, %v319_v52  ;;  %v318_v59 = vld [vmem:[%s1260_s29 + $0x1e0] sm:$0xff]  ;;  %v320_v60 = vld [vmem:[%s1260_s29 + $0x1f0] sm:$0xff] }
  0x87   : > { %809 = vmatprep.subr.bf16.mxu0 %v808_v0  ;;  %v828_v61 = vpack.c.bf16 %v385_v55, %v383_v54  ;;  %v382_v62 = vld [vmem:[%s1260_s29 + $0x3e0] sm:$0xff]  ;;  %v384_v63 = vld [vmem:[%s1260_s29 + $0x3f0] sm:$0xff]  ;;  %v766_v0 = vpack.c.bf16 %v320_v60, %v318_v59  ;;  %v255_v4 = vld [vmem:[#allocation2 + $0x28] sm:$0xff] }
  0x88   : > { %747 = vmatpush1.bf16.msra.mxu1 %v746_v6  ;;  %v830_v1 = vpack.c.bf16 %v384_v63, %v382_v62  ;;  %v250_v2 = vld [vmem:[#allocation2] sm:$0xff]  ;;  %v252_v3 = vld [vmem:[#allocation2 + $0x10] sm:$0xff]  ;;  %v257_v5 = vld [vmem:[#allocation2 + $0x38] sm:$0xff] }
  0x89   : > { %749 = vmatprep.subr.bf16.mxu1 %v748_v9  ;;  %v254_v6 = vld [vmem:[#allocation2 + $0x20] sm:$0xff]  ;;  %v256_v7 = vld [vmem:[#allocation2 + $0x30] sm:$0xff] }
  0x8a   : > { %811 = vmatpush1.bf16.msra.mxu0 %v810_v8  ;;  %v388_v8 = vlaneseq  ;;  %v386_v11 = vld [vmem:[%s246_s18] sm:$0x3] }
  0x8b   : > { %813 = vmatprep.subr.bf16.mxu0 %v812_v13 }
  0x8c   : > { %751 = vmatpush1.bf16.msra.mxu1 %v750_v20  ;;  %v389_v9 = vshrl.u32 %v388_v8, 7 }
  0x8d   : > { %753 = vmatprep.subr.bf16.mxu1 %v752_v22 }
  0x8e   : > { %815 = vmatpush1.bf16.msra.mxu0 %v814_v21  ;;  %v390_v10 = vsub.s32 0, %v389_v9  ;;  %v394_v12 = vsub.s32 1, %v389_v9 }
  0x8f   : > { %817 = vmatprep.subr.bf16.mxu0 %v816_v26 }
  0x90   : > { %755 = vmatpush1.bf16.msra.mxu1 %v754_v32  ;;  %v391_v13 = vrot.slane %v386_v11, %v390_v10  ;;  %v395_v14 = vrot.slane %v386_v11, %v394_v12 }
  0x91   : > { %757 = vmatprep.subr.bf16.mxu1 %v756_v34 }
  0x92   : > { %819 = vmatpush1.bf16.msra.mxu0 %v818_v33 }
  0x93   : > { %821 = vmatprep.subr.bf16.mxu0 %v820_v38 }
  0x94   : > { %759 = vmatpush1.bf16.msra.mxu1 %v758_v44 }
  0x95   : > { %761 = vmatprep.subr.bf16.mxu1 %v760_v46 }
  0x96   : > { %823 = vmatpush1.bf16.msra.mxu0 %v822_v45 }
  0x97   : > { %825 = vmatprep.subr.bf16.mxu0 %v824_v50 }
  0x98   : > { %763 = vmatpush1.bf16.msra.mxu1 %v762_v56 }
  0x99   : > { %765 = vmatprep.subr.bf16.mxu1 %v764_v58 }
  0x9a   : > { %827 = vmatpush1.bf16.msra.mxu0 %v826_v57 }
  0x9b   : > { %829 = vmatprep.subr.bf16.mxu0 %v828_v61 }
  0x9c   : > { %767 = vmatpush1.bf16.msra.mxu1 %v766_v0 }
  0x9e   : > { %831 = vmatpush1.bf16.msra.mxu0 %v830_v1 }
  0x9f   : > { %463 = vmatmul.mubr.f32.vlgmr.msra.gmra.mrb[0].mxu1 %v250_v2 }
  0xa0   : > { %468 = vmatprep.mubr.f32.mxu1 %v255_v4 }
  0xa1   : > { %540 = vmatmul.mubr.f32.vlgmr.msra.gmra.mrb[0].mxu0 %v252_v3 }
  0xa2   : > { %545 = vmatprep.mubr.f32.mxu0 %v257_v5 }
  0xa3   : > { %469 = vmatmul.mubr.f32.gmra.mrb[2].mxu1 %v254_v6 }
  0xa5   : > { %546 = vmatmul.mubr.f32.gmra.mrb[2].mxu0 %v256_v7 }
 0x172   : > { %v464_v15 = vpop.f32.mrb[0].mxu1 }
 0x173   : > { %v465_v16 = vadd.f32 %v464_v15, %v391_v13  ;;  %v466_v17 = vpop.f32.mrb[1].mxu1 }
 0x174   : > { %v541_v18 = vpop.f32.mrb[0].mxu0  ;;  %v467_v19 = vadd.f32 %v466_v17, %v395_v14 }
 0x175   : > { %v543_v20 = vpop.f32.mrb[1].mxu0  ;;  %v542_v21 = vadd.f32 %v541_v18, %v465_v16 }
 0x176   : > { %v544_v22 = vadd.f32 %v543_v20, %v467_v19  ;;  %v470_v23 = vpop.f32.mrb[2].mxu1 }
 0x177   : > { %v552_v24 = vmax.f32 %v542_v21, 0.0  ;;  %v471_v25 = vadd.f32 %v470_v23, %v391_v13  ;;  %v472_v26 = vpop.f32.mrb[3].mxu1 }
 0x178   : > { %v547_v27 = vpop.f32.mrb[2].mxu0  ;;  %v553_v28 = vmax.f32 %v544_v22, 0.0  ;;  %v473_v29 = vadd.f32 %v472_v26, %v395_v14 }
 0x179   : > { %v549_v30 = vpop.f32.mrb[3].mxu0  ;;  %556 = vst [vmem:[%s240_s11] sm:$0xff] %v552_v24  ;;  %v548_v31 = vadd.f32 %v547_v27, %v471_v25 }
 0x17a   : > { %557 = vst [vmem:[%s240_s11 + $0x8] sm:$0xff] %v553_v28  ;;  %v550_v32 = vadd.f32 %v549_v30, %v473_v29 }
 0x17b   : > { %v554_v33 = vmax.f32 %v548_v31, 0.0 }
 0x17c   : > { %v555_v34 = vmax.f32 %v550_v32, 0.0 }
 0x17d   : > { %558 = vst [vmem:[%s240_s11 + $0x10] sm:$0xff] %v554_v33 }
 0x17e   : > { %559 = vst [vmem:[%s240_s11 + $0x18] sm:$0xff] %v555_v34 }
 0x17f   : > { %991 = shalt.err (!%p988_p0)
}
 0x180   : > { %s992_s29 = scalar_lea.hbm %s1405_s7, 512  ;;  %s996_s25 = scalar_lea.hbm %s1457_s3, 1024 }
 0x181   : > { %p993_p2 = scmp.ne.s32.totalorder %s1405_s7, %s992_s29  ;;  %p997_p5 = scmp.lt.u32.totalorder %s1405_s7, %s1457_s3 }
 0x182   : > { %p998_p8 = scmp.lt.u32.totalorder %s996_s25, %s992_s29  ;;  %p1000_p11 = scmp.lt.u32.totalorder %s992_s29, %s1405_s7 }
 0x183   : > { %p994_p7 = pnand %p993_p2, %p1476_p13 }
 0x184   : > { %p999_p9 = por %p998_p8, %p997_p5 }
 0x185   : > { %p995_p12 = pneg %p994_p7 }
 0x186   : > { %p1001_p4 = por %p1000_p11, %p999_p9 }
 0x188   : > { %p1002_p1 = pnand %p1001_p4, %p995_p12 }
 0x18a   : > { %1005 = shalt.err (!%p1002_p1)
}
 0x18b   : > { %s1073_s11 = smov 256   ;;  %s1074_s4 = smov 512  }
 0x18c   : > { %s1075_s5 = smov 16  }
 0x18d   : > { %846 = dma.vmem_to_hbm [thread:$0]  (%p1476_p13), %s1400_s21, 512, %s1405_s7, %s561_s26, %s1073_s11, %s1074_s4, %s1075_s5  }
 0x18e PF: > { %s592_s27 = sand.u32 1, %s1044_s12   ;;  %p1477_p10 = scmp.ne.s32.totalorder %s1468_s24, 0 }
 0x18f   : > { %p1478_p3 = scmp.ge.s32.totalorder %s1064_s17, 2  ;;  %s593_s15 = scalar_lea.sflag [#allocation4], %s592_s27 }
 0x191   : > { %p857_p6 = pnand %p1478_p3, %p1477_p10 }
 0x193   : > { %1039 = dma.done.wait (!%p857_p6), %s593_s15, 512  }
 0x194   : > { %1041 = vsyncadd (!%p857_p6), %s593_s15, 4294966784  ;;  %s20_s17 = sadd.s32 1, %s1064_s17   ;;  %s1479_s12 = smov %s1048_s13 }
 0x195   : > { %p17_p0 = scmp.ge.s32.totalorder %s20_s17, 4   ;;  %s1480_s13 = smov %s1052_s14 }
 0x196   : > { %s1481_s14 = smov %s1216_s19  ;;  %s1482_s15 = smov %s1060_s16 }
 0x197   : > { %s1483_s16 = smov %s1485_s30  ;;  %19 = sbr.rel (!%p17_p0) target bundleno = 7 (0x7), region = 86 }
 0x19e   :  { %598 = vsyncpa [#allocation3], 1 }
 0x19f   :  { %600 = vsyncpa [#allocation3 + $0x1], 1 }
 0x1a0   :  { %601 = vsyncpa [#allocation6], 1 }
 0x1a1   :  { %603 = vsyncpa [#allocation6 + $0x1], 1 }
 0x1a2   :  { %604 = vsyncpa [#allocation4], 1 }
 0x1a3   :  { %606 = vsyncpa [#allocation4 + $0x1], 1 }

</bundles_post_ra>
